<compile_context>
chip_gen: v7x
topology: tpu7x:2x2x1
jax: 0.10.0
libtpu: 0.0.40
codegen_flags: <defaults>
</compile_context>

<pallas_src>
import functools

import jax
import jax.numpy as jnp
from jax.experimental import pallas as pl
from jax.experimental.pallas import tpu as pltpu


def _gat_kernel(x_ref, adj_ref, ai_ref, aj_ref, wblk_ref, bblk_ref,
                out_ref, att_ref, *, n_heads, d, batch, mxu_dtype):
    # x_ref:    (1, N, in_dim)    this batch's features (all heads packed on lanes)
    # adj_ref:  (B, N, N) int8    full adjacency, single-buffered constant block
    # ai_ref:   (1, in_dim)       a_i tiled per head
    # aj_ref:   (H, in_dim)       row h = a_j placed at lanes [h*d, (h+1)*d)
    # wblk_ref: (H*d, H*out_d)    block-diagonal fc weight (mxu_dtype)
    # bblk_ref: (1, H*out_d)      fc bias tiled per head (f32)
    # out_ref:  (1, N, H*out_d)   merged-head output (single lane-dense store)
    # att_ref:  (1, H, N, N)      attention probabilities (att dtype, e.g. bf16)
    b = pl.program_id(0)

    x_full = x_ref[0].astype(jnp.float32)                       # (N, in_dim)

    # Batched score projections (scores kept in f32; MXU cost here is tiny).
    # x_j for all heads: (H, in_dim) x (N, in_dim)^T -> (H, N), one MXU push.
    sj_all = jax.lax.dot_general(aj_ref[...], x_full, (((1,), (1,)), ((), ())),
                                 preferred_element_type=jnp.float32)
    # x_i for all heads: one lane-dense VPU multiply; per-head segmented reduce below.
    xi_prod = x_full * ai_ref[...]                               # (N, in_dim)

    x_mm = x_full.astype(mxu_dtype)                              # MXU input for att @ x_h

    # Heads that map to the same adjacency (h1 == h2 mod B) share the mask.
    masks = {}
    hids = []
    for h in range(n_heads):                                     # static unroll, H small
        key = h % batch
        if key not in masks:
            # original module: adj.repeat(n_heads,1,1)[k] == adj[k % B], k = b*H + h
            adj_idx = (b * n_heads + h) % batch
            masks[key] = adj_ref[adj_idx] != 0                   # (N, N) bool
        mask = masks[key]

        si = jnp.sum(xi_prod[:, h * d:(h + 1) * d], axis=-1, keepdims=True)  # (N, 1)
        sj = sj_all[h:h + 1, :]                                               # (1, N)
        scores = si + sj                                                      # (N, N)
        # F.leaky_relu (negative_slope=0.01) == max(x, 0.01*x)
        scores = jnp.maximum(scores, 0.01 * scores)
        # torch.where(adj.bool(), scores, -1e9)
        scores = jnp.where(mask, scores, -1.0e9)

        # softmax over last axis (f32 math; only the store is narrowed)
        m = jnp.max(scores, axis=-1, keepdims=True)
        p = jnp.exp(scores - m)
        s = jnp.sum(p, axis=-1, keepdims=True)
        att = p * pl.reciprocal(s, approx=True)                  # (N, N)
        att_ref[0, h, :, :] = att.astype(att_ref.dtype)

        # att @ x_h  (bf16 MXU inputs by default, f32 accumulation)
        hid = jnp.dot(att.astype(mxu_dtype), x_mm[:, h * d:(h + 1) * d],
                      preferred_element_type=jnp.float32)        # (N, d)
        hids.append(hid)

    # ReLU then one fused block-diagonal projection -> merged-head (N, H*out_d)
    hid_all = jnp.maximum(jnp.concatenate(hids, axis=-1), 0.0)   # (N, H*d)
    out = jnp.dot(hid_all.astype(mxu_dtype), wblk_ref[...],
                  preferred_element_type=jnp.float32) + bblk_ref[...]
    out_ref[0] = out.astype(out_ref.dtype)


def graph_attention_pallas(x, adj, att_w, fc_w, fc_b, n_heads, *,
                           att_dtype=jnp.bfloat16, mxu_dtype=jnp.bfloat16):
    """
    x:     (B, N, in_dim) float32
    adj:   (B, N, N)      (nonzero == edge)
    att_w: (1, 2*d)  att_layer.weight, d = in_dim // n_heads
    fc_w:  (out_d, d)  fc Linear weight
    fc_b:  (out_d,)    fc Linear bias
    Returns (out (B, N, n_heads*out_d) float32, att_prob (B*n_heads, N, N) att_dtype).
    """
    B, N, in_dim = x.shape
    H = n_heads
    d = in_dim // H
    out_d = fc_w.shape[0]

    # ---- parameter prep (plain JAX glue) ----
    ai = att_w[0, :d].astype(jnp.float32)                             # (d,)
    aj = att_w[0, d:].astype(jnp.float32)                             # (d,)
    ai_full = jnp.tile(ai, (H,)).reshape(1, in_dim)                   # (1, in_dim)
    eye_h = jnp.eye(H, dtype=jnp.float32)
    aj_mat = jnp.kron(eye_h, aj.reshape(1, d))                        # (H, in_dim)
    w_blk = jnp.kron(eye_h, fc_w.T.astype(jnp.float32)).astype(mxu_dtype)  # (H*d, H*out_d)
    b_blk = jnp.tile(fc_b.astype(jnp.float32), (H,)).reshape(1, H * out_d)
    adj_i8 = (adj != 0).astype(jnp.int8)                              # 4x smaller than f32

    kernel = functools.partial(_gat_kernel, n_heads=H, d=d, batch=B,
                               mxu_dtype=mxu_dtype)

    # explicit VMEM budget sized from the actual blocks (+headroom for temps)
    att_bytes = jnp.dtype(att_dtype).itemsize
    mm_bytes = jnp.dtype(mxu_dtype).itemsize
    est = (B * N * N * 1                          # adj int8, single-buffered
           + 2 * N * in_dim * 4                   # x block, double-buffered
           + 2 * N * H * out_d * 4                # out block
           + 2 * H * N * N * att_bytes            # att block
           + (H * d) * (H * out_d) * mm_bytes     # block-diag weight
           + (2 * H + 2) * in_dim * 4)            # small param vectors
    vmem_limit = int(min(100 * 1024 * 1024, max(2 * est + (4 << 20), 16 << 20)))
    # TODO(synk): on v7x (64 MiB VMEM) with large B*N*N, replace the resident int8
    # adjacency with manual double-buffered (N,N) slice DMAs (pl.ANY + make_async_copy)
    # and add a query-row tile grid axis (tq~256-512) for megacore balance.

    def const_spec(shape):
        # constant index_map -> DMA'd once and kept single-buffered
        nd = len(shape)
        return pl.BlockSpec(shape, lambda b, _n=nd: (0,) * _n,
                            pipeline_mode=pl.Buffered(1))

    out, att4 = pl.pallas_call(
        kernel,
        out_shape=(jax.ShapeDtypeStruct((B, N, H * out_d), jnp.float32),
                   jax.ShapeDtypeStruct((B, H, N, N), att_dtype)),
        grid_spec=pltpu.PrefetchScalarGridSpec(
            num_scalar_prefetch=0,
            grid=(B,),
            in_specs=[
                pl.BlockSpec((1, N, in_dim), lambda b: (b, 0, 0)),
                const_spec((B, N, N)),            # int8 adjacency
                const_spec((1, in_dim)),          # ai_full
                const_spec((H, in_dim)),          # aj_mat
                const_spec((H * d, H * out_d)),   # block-diag fc weight
                const_spec((1, H * out_d)),       # tiled fc bias
            ],
            out_specs=[
                pl.BlockSpec((1, N, H * out_d), lambda b: (b, 0, 0)),
                pl.BlockSpec((1, H, N, N), lambda b: (b, 0, 0, 0)),
            ],
        ),
        compiler_params=pltpu.CompilerParams(
            dimension_semantics=("parallel",),
            vmem_limit_bytes=vmem_limit),
    )(x.astype(jnp.float32), adj_i8, ai_full, aj_mat, w_blk, b_blk)

    # (B, H, N, N) -> (B*H, N, N): pure reshape (flat k = b*H + h), no transpose
    att = att4.reshape(B * H, N, N)
    return out, att


def _reference_jax(x, adj, att_w, fc_w, fc_b, n_heads):
    """Pure-JAX reference mirroring the PyTorch forward (linear att, relu)."""
    B, N, in_dim = x.shape
    d = in_dim // n_heads
    x_h = x.reshape(B, N, n_heads, d).transpose(0, 2, 1, 3).reshape(B * n_heads, N, d)
    adj_rep = jnp.tile(adj, (n_heads, 1, 1))
    ai = att_w[0, :d]
    aj = att_w[0, d:]
    x_i = jnp.einsum('bnd,d->bn', x_h, ai)[:, :, None]     # (BH, N, 1)
    x_j = jnp.einsum('bnd,d->bn', x_h, aj)[:, None, :]     # (BH, 1, N)
    sc = x_i + x_j
    sc = jnp.where(sc >= 0, sc, 0.01 * sc)
    sc = jnp.where(adj_rep != 0, sc, -1.0e9)
    att = jax.nn.softmax(sc, axis=2)
    h = jnp.einsum('bij,bjd->bid', att, x_h)
    h = jnp.maximum(h, 0.0)
    o = jnp.einsum('bnd,od->bno', h, fc_w) + fc_b
    out = o.reshape(B, n_heads, N, fc_w.shape[0]).transpose(0, 2, 1, 3) \
           .reshape(B, N, n_heads * fc_w.shape[0])
    return out, att


if __name__ == "__main__":
    # Small deterministic example: batch=2, nodes=8, in_dim=16, out_dim=16, heads=4
    B, N, IN_DIM, OUT_DIM, H = 2, 8, 16, 16, 4
    d = IN_DIM // H
    out_d = OUT_DIM // H

    key = jax.random.PRNGKey(0)
    kx, ka, kw1, kw2, kb = jax.random.split(key, 5)

    x = jax.random.normal(kx, (B, N, IN_DIM), dtype=jnp.float32)
    # random adjacency (with self-loops so no row is fully masked)
    adj = (jax.random.uniform(ka, (B, N, N)) > 0.5).astype(jnp.float32)
    adj = jnp.maximum(adj, jnp.eye(N, dtype=jnp.float32)[None])

    # deterministic "synthetic checkpoint" parameters
    att_w = 0.1 * jax.random.normal(kw1, (1, 2 * d), dtype=jnp.float32)   # att_layer.weight
    fc_w = 0.1 * jax.random.normal(kw2, (out_d, d), dtype=jnp.float32)    # fc[1].weight
    fc_b = 0.1 * jax.random.normal(kb, (out_d,), dtype=jnp.float32)       # fc[1].bias

    out_ref, att_ref = _reference_jax(x, adj, att_w, fc_w, fc_b, H)

    # 1) f32 everywhere -> tight check of the kernel algorithm
    out32, att32 = graph_attention_pallas(x, adj, att_w, fc_w, fc_b, H,
                                          att_dtype=jnp.float32,
                                          mxu_dtype=jnp.float32)
    jax.block_until_ready((out32, att32))
    assert jnp.allclose(out32, out_ref, rtol=1e-2, atol=1e-3), "f32 output mismatch"
    assert jnp.allclose(att32, att_ref, rtol=1e-2, atol=1e-3), "f32 attention mismatch"

    # 2) default perf config: bf16 attention writeback + bf16 MXU operands
    out_bf, att_bf = graph_attention_pallas(x, adj, att_w, fc_w, fc_b, H)
    jax.block_until_ready((out_bf, att_bf))
    assert jnp.allclose(out_bf, out_ref, rtol=5e-2, atol=1e-2), "bf16 output mismatch"
    assert jnp.allclose(att_bf.astype(jnp.float32), att_ref,
                        rtol=5e-2, atol=1e-2), "bf16 attention mismatch"

    print("KERNEL_OK")
</pallas_src>

<mosaic_0001>
module attributes {stable_mosaic.version = 11 : i64} {
  func.func @_gat_kernel(%arg0: i32, %arg1: memref<1x8x16xf32, #tpu.memory_space<vmem>>, %arg2: memref<2x8x8xi8, #tpu.memory_space<vmem>>, %arg3: memref<1x16xf32, #tpu.memory_space<vmem>>, %arg4: memref<4x16xf32, #tpu.memory_space<vmem>>, %arg5: memref<16x16xf32, #tpu.memory_space<vmem>>, %arg6: memref<1x16xf32, #tpu.memory_space<vmem>>, %arg7: memref<1x8x16xf32, #tpu.memory_space<vmem>>, %arg8: memref<1x4x8x8xf32, #tpu.memory_space<vmem>>) attributes {dimension_semantics = [#tpu.dimension_semantics<parallel>], iteration_bounds = array<i64: 2>, scalar_prefetch = 0 : i64, scratch_operands = 0 : i64, tpu.core_type = #tpu.core_type<tc>, window_params = [{transform_indices = @transform_0, window_bounds = array<i64: 1, 8, 16>}, {pipeline_mode = #tpu.pipeline_mode<synchronous>, transform_indices = @transform_1, window_bounds = array<i64: 2, 8, 8>}, {pipeline_mode = #tpu.pipeline_mode<synchronous>, transform_indices = @transform_2, window_bounds = array<i64: 1, 16>}, {pipeline_mode = #tpu.pipeline_mode<synchronous>, transform_indices = @transform_3, window_bounds = array<i64: 4, 16>}, {pipeline_mode = #tpu.pipeline_mode<synchronous>, transform_indices = @transform_4, window_bounds = array<i64: 16, 16>}, {pipeline_mode = #tpu.pipeline_mode<synchronous>, transform_indices = @transform_5, window_bounds = array<i64: 1, 16>}, {transform_indices = @transform_6, window_bounds = array<i64: 1, 8, 16>}, {transform_indices = @transform_7, window_bounds = array<i64: 1, 4, 8, 8>}]} {
    %c0 = arith.constant 0 : index
    %c0_0 = arith.constant 0 : index
    %c0_1 = arith.constant 0 : index
    %0 = vector.load %arg1[%c0, %c0_0, %c0_1] : memref<1x8x16xf32, #tpu.memory_space<vmem>>, vector<1x8x16xf32>
    %1 = vector.shape_cast %0 : vector<1x8x16xf32> to vector<8x16xf32>
    %c0_2 = arith.constant 0 : index
    %c0_3 = arith.constant 0 : index
    %2 = vector.load %arg4[%c0_2, %c0_3] : memref<4x16xf32, #tpu.memory_space<vmem>>, vector<4x16xf32>
    %cst = arith.constant dense<0.000000e+00> : vector<4x8xf32>
    %3 = tpu.matmul %2, %1, %cst {dimension_numbers = #tpu.dot_dimension_numbers<[1], [1], [0], [0], [0, 0, 1, 0], [], []>} : vector<4x16xf32>, vector<8x16xf32>, vector<4x8xf32> -> vector<4x8xf32>
    %c0_4 = arith.constant 0 : index
    %c0_5 = arith.constant 0 : index
    %4 = vector.load %arg3[%c0_4, %c0_5] : memref<1x16xf32, #tpu.memory_space<vmem>>, vector<1x16xf32>
    %5 = vector.broadcast %4 : vector<1x16xf32> to vector<8x16xf32>
    %6 = arith.mulf %1, %5 : vector<8x16xf32>
    %c4_i32 = arith.constant 4 : i32
    %7 = arith.muli %arg0, %c4_i32 : i32
    %c0_i32 = arith.constant 0 : i32
    %8 = arith.addi %7, %c0_i32 : i32
    %c2_i32 = arith.constant 2 : i32
    %c0_i32_6 = arith.constant 0 : i32
    %9 = arith.cmpi eq, %c2_i32, %c0_i32_6 : i32
    %c1_i32 = arith.constant 1 : i32
    %10 = arith.select %9, %c1_i32, %c2_i32 : i32
    %11 = arith.remsi %8, %10 : i32
    %c0_i32_7 = arith.constant 0 : i32
    %12 = arith.cmpi ne, %11, %c0_i32_7 : i32
    %c0_i32_8 = arith.constant 0 : i32
    %13 = arith.cmpi slt, %11, %c0_i32_8 : i32
    %c0_i32_9 = arith.constant 0 : i32
    %14 = arith.cmpi slt, %10, %c0_i32_9 : i32
    %15 = arith.xori %13, %14 : i1
    %16 = arith.andi %15, %12 : i1
    %17 = arith.addi %11, %10 : i32
    %18 = arith.select %16, %17, %11 : i32
    %19 = arith.index_cast %18 : i32 to index
    %c0_10 = arith.constant 0 : index
    %c0_11 = arith.constant 0 : index
    %20 = vector.load %arg2[%19, %c0_10, %c0_11] : memref<2x8x8xi8, #tpu.memory_space<vmem>>, vector<1x8x8xi8>
    %21 = vector.shape_cast %20 : vector<1x8x8xi8> to vector<8x8xi8>
    %c0_i8 = arith.constant 0 : i8
    %22 = vector.broadcast %c0_i8 : i8 to vector<8x8xi8>
    %23 = arith.cmpi ne, %21, %22 : vector<8x8xi8>
    %24 = vector.extract_strided_slice %6 {offsets = [0, 0], sizes = [8, 4], strides = [1, 1]} : vector<8x16xf32> to vector<8x4xf32>
    %cst_12 = arith.constant dense<0.000000e+00> : vector<8xf32>
    %25 = vector.multi_reduction <add>, %24, %cst_12 [1] : vector<8x4xf32> to vector<8xf32>
    %26 = vector.shape_cast %25 : vector<8xf32> to vector<8x1xf32>
    %27 = vector.extract_strided_slice %3 {offsets = [0, 0], sizes = [1, 8], strides = [1, 1]} : vector<4x8xf32> to vector<1x8xf32>
    %28 = vector.broadcast %26 : vector<8x1xf32> to vector<8x8xf32>
    %29 = vector.broadcast %27 : vector<1x8xf32> to vector<8x8xf32>
    %30 = arith.addf %28, %29 : vector<8x8xf32>
    %cst_13 = arith.constant 0.00999999977 : f32
    %31 = vector.broadcast %cst_13 : f32 to vector<8x8xf32>
    %32 = arith.mulf %31, %30 : vector<8x8xf32>
    %33 = arith.maximumf %30, %32 : vector<8x8xf32>
    %cst_14 = arith.constant -1.000000e+09 : f32
    %34 = vector.broadcast %cst_14 : f32 to vector<8x8xf32>
    %35 = arith.select %23, %33, %34 : vector<8x8xi1>, vector<8x8xf32>
    %cst_15 = arith.constant dense<0xFF800000> : vector<8xf32>
    %36 = vector.multi_reduction <maximumf>, %35, %cst_15 [1] : vector<8x8xf32> to vector<8xf32>
    %37 = vector.shape_cast %36 : vector<8xf32> to vector<8x1xf32>
    %38 = vector.broadcast %37 : vector<8x1xf32> to vector<8x8xf32>
    %39 = arith.subf %35, %38 : vector<8x8xf32>
    %40 = math.exp %39 : vector<8x8xf32>
    %cst_16 = arith.constant dense<0.000000e+00> : vector<8xf32>
    %41 = vector.multi_reduction <add>, %40, %cst_16 [1] : vector<8x8xf32> to vector<8xf32>
    %42 = vector.shape_cast %41 : vector<8xf32> to vector<8x1xf32>
    %43 = tpu.reciprocal %42 {approx = true} : vector<8x1xf32> -> vector<8x1xf32>
    %44 = vector.broadcast %43 : vector<8x1xf32> to vector<8x8xf32>
    %45 = arith.mulf %40, %44 : vector<8x8xf32>
    %c0_17 = arith.constant 0 : index
    %c0_18 = arith.constant 0 : index
    %c0_19 = arith.constant 0 : index
    %c0_20 = arith.constant 0 : index
    %46 = vector.load %arg8[%c0_17, %c0_18, %c0_19, %c0_20] : memref<1x4x8x8xf32, #tpu.memory_space<vmem>>, vector<1x1x8x8xf32>
    %47 = vector.shape_cast %46 : vector<1x1x8x8xf32> to vector<8x8xf32>
    %48 = vector.shape_cast %45 : vector<8x8xf32> to vector<1x1x8x8xf32>
    tpu.vector_store %arg8[%c0_17, %c0_18, %c0_19, %c0_20], %48 {strides = array<i32>} : memref<1x4x8x8xf32, #tpu.memory_space<vmem>>, vector<1x1x8x8xf32>,
    %49 = vector.extract_strided_slice %1 {offsets = [0, 0], sizes = [8, 4], strides = [1, 1]} : vector<8x16xf32> to vector<8x4xf32>
    %cst_21 = arith.constant dense<0.000000e+00> : vector<8x4xf32>
    %50 = tpu.matmul %45, %49, %cst_21 {dimension_numbers = #tpu.dot_dimension_numbers<[1], [0], [0], [1], [0, 0, 1, 1], [], []>} : vector<8x8xf32>, vector<8x4xf32>, vector<8x4xf32> -> vector<8x4xf32>
    %c4_i32_22 = arith.constant 4 : i32
    %51 = arith.muli %arg0, %c4_i32_22 : i32
    %c1_i32_23 = arith.constant 1 : i32
    %52 = arith.addi %51, %c1_i32_23 : i32
    %c2_i32_24 = arith.constant 2 : i32
    %c0_i32_25 = arith.constant 0 : i32
    %53 = arith.cmpi eq, %c2_i32_24, %c0_i32_25 : i32
    %c1_i32_26 = arith.constant 1 : i32
    %54 = arith.select %53, %c1_i32_26, %c2_i32_24 : i32
    %55 = arith.remsi %52, %54 : i32
    %c0_i32_27 = arith.constant 0 : i32
    %56 = arith.cmpi ne, %55, %c0_i32_27 : i32
    %c0_i32_28 = arith.constant 0 : i32
    %57 = arith.cmpi slt, %55, %c0_i32_28 : i32
    %c0_i32_29 = arith.constant 0 : i32
    %58 = arith.cmpi slt, %54, %c0_i32_29 : i32
    %59 = arith.xori %57, %58 : i1
    %60 = arith.andi %59, %56 : i1
    %61 = arith.addi %55, %54 : i32
    %62 = arith.select %60, %61, %55 : i32
    %63 = arith.index_cast %62 : i32 to index
    %c0_30 = arith.constant 0 : index
    %c0_31 = arith.constant 0 : index
    %64 = vector.load %arg2[%63, %c0_30, %c0_31] : memref<2x8x8xi8, #tpu.memory_space<vmem>>, vector<1x8x8xi8>
    %65 = vector.shape_cast %64 : vector<1x8x8xi8> to vector<8x8xi8>
    %c0_i8_32 = arith.constant 0 : i8
    %66 = vector.broadcast %c0_i8_32 : i8 to vector<8x8xi8>
    %67 = arith.cmpi ne, %65, %66 : vector<8x8xi8>
    %68 = vector.extract_strided_slice %6 {offsets = [0, 4], sizes = [8, 4], strides = [1, 1]} : vector<8x16xf32> to vector<8x4xf32>
    %cst_33 = arith.constant dense<0.000000e+00> : vector<8xf32>
    %69 = vector.multi_reduction <add>, %68, %cst_33 [1] : vector<8x4xf32> to vector<8xf32>
    %70 = vector.shape_cast %69 : vector<8xf32> to vector<8x1xf32>
    %71 = vector.extract_strided_slice %3 {offsets = [1, 0], sizes = [1, 8], strides = [1, 1]} : vector<4x8xf32> to vector<1x8xf32>
    %72 = vector.broadcast %70 : vector<8x1xf32> to vector<8x8xf32>
    %73 = vector.broadcast %71 : vector<1x8xf32> to vector<8x8xf32>
    %74 = arith.addf %72, %73 : vector<8x8xf32>
    %cst_34 = arith.constant 0.00999999977 : f32
    %75 = vector.broadcast %cst_34 : f32 to vector<8x8xf32>
    %76 = arith.mulf %75, %74 : vector<8x8xf32>
    %77 = arith.maximumf %74, %76 : vector<8x8xf32>
    %cst_35 = arith.constant -1.000000e+09 : f32
    %78 = vector.broadcast %cst_35 : f32 to vector<8x8xf32>
    %79 = arith.select %67, %77, %78 : vector<8x8xi1>, vector<8x8xf32>
    %cst_36 = arith.constant dense<0xFF800000> : vector<8xf32>
    %80 = vector.multi_reduction <maximumf>, %79, %cst_36 [1] : vector<8x8xf32> to vector<8xf32>
    %81 = vector.shape_cast %80 : vector<8xf32> to vector<8x1xf32>
    %82 = vector.broadcast %81 : vector<8x1xf32> to vector<8x8xf32>
    %83 = arith.subf %79, %82 : vector<8x8xf32>
    %84 = math.exp %83 : vector<8x8xf32>
    %cst_37 = arith.constant dense<0.000000e+00> : vector<8xf32>
    %85 = vector.multi_reduction <add>, %84, %cst_37 [1] : vector<8x8xf32> to vector<8xf32>
    %86 = vector.shape_cast %85 : vector<8xf32> to vector<8x1xf32>
    %87 = tpu.reciprocal %86 {approx = true} : vector<8x1xf32> -> vector<8x1xf32>
    %88 = vector.broadcast %87 : vector<8x1xf32> to vector<8x8xf32>
    %89 = arith.mulf %84, %88 : vector<8x8xf32>
    %c0_38 = arith.constant 0 : index
    %c1 = arith.constant 1 : index
    %c0_39 = arith.constant 0 : index
    %c0_40 = arith.constant 0 : index
    %90 = vector.load %arg8[%c0_38, %c1, %c0_39, %c0_40] : memref<1x4x8x8xf32, #tpu.memory_space<vmem>>, vector<1x1x8x8xf32>
    %91 = vector.shape_cast %90 : vector<1x1x8x8xf32> to vector<8x8xf32>
    %92 = vector.shape_cast %89 : vector<8x8xf32> to vector<1x1x8x8xf32>
    tpu.vector_store %arg8[%c0_38, %c1, %c0_39, %c0_40], %92 {strides = array<i32>} : memref<1x4x8x8xf32, #tpu.memory_space<vmem>>, vector<1x1x8x8xf32>,
    %93 = vector.extract_strided_slice %1 {offsets = [0, 4], sizes = [8, 4], strides = [1, 1]} : vector<8x16xf32> to vector<8x4xf32>
    %cst_41 = arith.constant dense<0.000000e+00> : vector<8x4xf32>
    %94 = tpu.matmul %89, %93, %cst_41 {dimension_numbers = #tpu.dot_dimension_numbers<[1], [0], [0], [1], [0, 0, 1, 1], [], []>} : vector<8x8xf32>, vector<8x4xf32>, vector<8x4xf32> -> vector<8x4xf32>
    %95 = vector.extract_strided_slice %6 {offsets = [0, 8], sizes = [8, 4], strides = [1, 1]} : vector<8x16xf32> to vector<8x4xf32>
    %cst_42 = arith.constant dense<0.000000e+00> : vector<8xf32>
    %96 = vector.multi_reduction <add>, %95, %cst_42 [1] : vector<8x4xf32> to vector<8xf32>
    %97 = vector.shape_cast %96 : vector<8xf32> to vector<8x1xf32>
    %98 = vector.extract_strided_slice %3 {offsets = [2, 0], sizes = [1, 8], strides = [1, 1]} : vector<4x8xf32> to vector<1x8xf32>
    %99 = vector.broadcast %97 : vector<8x1xf32> to vector<8x8xf32>
    %100 = vector.broadcast %98 : vector<1x8xf32> to vector<8x8xf32>
    %101 = arith.addf %99, %100 : vector<8x8xf32>
    %cst_43 = arith.constant 0.00999999977 : f32
    %102 = vector.broadcast %cst_43 : f32 to vector<8x8xf32>
    %103 = arith.mulf %102, %101 : vector<8x8xf32>
    %104 = arith.maximumf %101, %103 : vector<8x8xf32>
    %cst_44 = arith.constant -1.000000e+09 : f32
    %105 = vector.broadcast %cst_44 : f32 to vector<8x8xf32>
    %106 = arith.select %23, %104, %105 : vector<8x8xi1>, vector<8x8xf32>
    %cst_45 = arith.constant dense<0xFF800000> : vector<8xf32>
    %107 = vector.multi_reduction <maximumf>, %106, %cst_45 [1] : vector<8x8xf32> to vector<8xf32>
    %108 = vector.shape_cast %107 : vector<8xf32> to vector<8x1xf32>
    %109 = vector.broadcast %108 : vector<8x1xf32> to vector<8x8xf32>
    %110 = arith.subf %106, %109 : vector<8x8xf32>
    %111 = math.exp %110 : vector<8x8xf32>
    %cst_46 = arith.constant dense<0.000000e+00> : vector<8xf32>
    %112 = vector.multi_reduction <add>, %111, %cst_46 [1] : vector<8x8xf32> to vector<8xf32>
    %113 = vector.shape_cast %112 : vector<8xf32> to vector<8x1xf32>
    %114 = tpu.reciprocal %113 {approx = true} : vector<8x1xf32> -> vector<8x1xf32>
    %115 = vector.broadcast %114 : vector<8x1xf32> to vector<8x8xf32>
    %116 = arith.mulf %111, %115 : vector<8x8xf32>
    %c0_47 = arith.constant 0 : index
    %c2 = arith.constant 2 : index
    %c0_48 = arith.constant 0 : index
    %c0_49 = arith.constant 0 : index
    %117 = vector.load %arg8[%c0_47, %c2, %c0_48, %c0_49] : memref<1x4x8x8xf32, #tpu.memory_space<vmem>>, vector<1x1x8x8xf32>
    %118 = vector.shape_cast %117 : vector<1x1x8x8xf32> to vector<8x8xf32>
    %119 = vector.shape_cast %116 : vector<8x8xf32> to vector<1x1x8x8xf32>
    tpu.vector_store %arg8[%c0_47, %c2, %c0_48, %c0_49], %119 {strides = array<i32>} : memref<1x4x8x8xf32, #tpu.memory_space<vmem>>, vector<1x1x8x8xf32>,
    %120 = vector.extract_strided_slice %1 {offsets = [0, 8], sizes = [8, 4], strides = [1, 1]} : vector<8x16xf32> to vector<8x4xf32>
    %cst_50 = arith.constant dense<0.000000e+00> : vector<8x4xf32>
    %121 = tpu.matmul %116, %120, %cst_50 {dimension_numbers = #tpu.dot_dimension_numbers<[1], [0], [0], [1], [0, 0, 1, 1], [], []>} : vector<8x8xf32>, vector<8x4xf32>, vector<8x4xf32> -> vector<8x4xf32>
    %122 = vector.extract_strided_slice %6 {offsets = [0, 12], sizes = [8, 4], strides = [1, 1]} : vector<8x16xf32> to vector<8x4xf32>
    %cst_51 = arith.constant dense<0.000000e+00> : vector<8xf32>
    %123 = vector.multi_reduction <add>, %122, %cst_51 [1] : vector<8x4xf32> to vector<8xf32>
    %124 = vector.shape_cast %123 : vector<8xf32> to vector<8x1xf32>
    %125 = vector.extract_strided_slice %3 {offsets = [3, 0], sizes = [1, 8], strides = [1, 1]} : vector<4x8xf32> to vector<1x8xf32>
    %126 = vector.broadcast %124 : vector<8x1xf32> to vector<8x8xf32>
    %127 = vector.broadcast %125 : vector<1x8xf32> to vector<8x8xf32>
    %128 = arith.addf %126, %127 : vector<8x8xf32>
    %cst_52 = arith.constant 0.00999999977 : f32
    %129 = vector.broadcast %cst_52 : f32 to vector<8x8xf32>
    %130 = arith.mulf %129, %128 : vector<8x8xf32>
    %131 = arith.maximumf %128, %130 : vector<8x8xf32>
    %cst_53 = arith.constant -1.000000e+09 : f32
    %132 = vector.broadcast %cst_53 : f32 to vector<8x8xf32>
    %133 = arith.select %67, %131, %132 : vector<8x8xi1>, vector<8x8xf32>
    %cst_54 = arith.constant dense<0xFF800000> : vector<8xf32>
    %134 = vector.multi_reduction <maximumf>, %133, %cst_54 [1] : vector<8x8xf32> to vector<8xf32>
    %135 = vector.shape_cast %134 : vector<8xf32> to vector<8x1xf32>
    %136 = vector.broadcast %135 : vector<8x1xf32> to vector<8x8xf32>
    %137 = arith.subf %133, %136 : vector<8x8xf32>
    %138 = math.exp %137 : vector<8x8xf32>
    %cst_55 = arith.constant dense<0.000000e+00> : vector<8xf32>
    %139 = vector.multi_reduction <add>, %138, %cst_55 [1] : vector<8x8xf32> to vector<8xf32>
    %140 = vector.shape_cast %139 : vector<8xf32> to vector<8x1xf32>
    %141 = tpu.reciprocal %140 {approx = true} : vector<8x1xf32> -> vector<8x1xf32>
    %142 = vector.broadcast %141 : vector<8x1xf32> to vector<8x8xf32>
    %143 = arith.mulf %138, %142 : vector<8x8xf32>
    %c0_56 = arith.constant 0 : index
    %c3 = arith.constant 3 : index
    %c0_57 = arith.constant 0 : index
    %c0_58 = arith.constant 0 : index
    %144 = vector.load %arg8[%c0_56, %c3, %c0_57, %c0_58] : memref<1x4x8x8xf32, #tpu.memory_space<vmem>>, vector<1x1x8x8xf32>
    %145 = vector.shape_cast %144 : vector<1x1x8x8xf32> to vector<8x8xf32>
    %146 = vector.shape_cast %143 : vector<8x8xf32> to vector<1x1x8x8xf32>
    tpu.vector_store %arg8[%c0_56, %c3, %c0_57, %c0_58], %146 {strides = array<i32>} : memref<1x4x8x8xf32, #tpu.memory_space<vmem>>, vector<1x1x8x8xf32>,
    %147 = vector.extract_strided_slice %1 {offsets = [0, 12], sizes = [8, 4], strides = [1, 1]} : vector<8x16xf32> to vector<8x4xf32>
    %cst_59 = arith.constant dense<0.000000e+00> : vector<8x4xf32>
    %148 = tpu.matmul %143, %147, %cst_59 {dimension_numbers = #tpu.dot_dimension_numbers<[1], [0], [0], [1], [0, 0, 1, 1], [], []>} : vector<8x8xf32>, vector<8x4xf32>, vector<8x4xf32> -> vector<8x4xf32>
    %149 = tpu.concatenate %50, %94, %121, %148 in 1 : vector<8x4xf32>, vector<8x4xf32>, vector<8x4xf32>, vector<8x4xf32> -> vector<8x16xf32>
    %cst_60 = arith.constant 0.000000e+00 : f32
    %150 = vector.broadcast %cst_60 : f32 to vector<8x16xf32>
    %151 = arith.maximumf %149, %150 : vector<8x16xf32>
    %c0_61 = arith.constant 0 : index
    %c0_62 = arith.constant 0 : index
    %152 = vector.load %arg5[%c0_61, %c0_62] : memref<16x16xf32, #tpu.memory_space<vmem>>, vector<16x16xf32>
    %cst_63 = arith.constant dense<0.000000e+00> : vector<8x16xf32>
    %153 = tpu.matmul %151, %152, %cst_63 {dimension_numbers = #tpu.dot_dimension_numbers<[1], [0], [0], [1], [0, 0, 1, 1], [], []>} : vector<8x16xf32>, vector<16x16xf32>, vector<8x16xf32> -> vector<8x16xf32>
    %c0_64 = arith.constant 0 : index
    %c0_65 = arith.constant 0 : index
    %154 = vector.load %arg6[%c0_64, %c0_65] : memref<1x16xf32, #tpu.memory_space<vmem>>, vector<1x16xf32>
    %155 = vector.broadcast %154 : vector<1x16xf32> to vector<8x16xf32>
    %156 = arith.addf %153, %155 : vector<8x16xf32>
    %c0_66 = arith.constant 0 : index
    %c0_67 = arith.constant 0 : index
    %c0_68 = arith.constant 0 : index
    %157 = vector.load %arg7[%c0_66, %c0_67, %c0_68] : memref<1x8x16xf32, #tpu.memory_space<vmem>>, vector<1x8x16xf32>
    %158 = vector.shape_cast %157 : vector<1x8x16xf32> to vector<8x16xf32>
    %159 = vector.shape_cast %156 : vector<8x16xf32> to vector<1x8x16xf32>
    tpu.vector_store %arg7[%c0_66, %c0_67, %c0_68], %159 {strides = array<i32>} : memref<1x8x16xf32, #tpu.memory_space<vmem>>, vector<1x8x16xf32>,
    return
  }
  func.func @transform_0(%arg0: i32) -> (i32, i32, i32) {
    %c0_i32 = arith.constant 0 : i32
    %c0_i32_0 = arith.constant 0 : i32
    %c0_i32_1 = arith.constant 0 : i32
    return %arg0, %c0_i32, %c0_i32_0 : i32, i32, i32
  }
  func.func @transform_1(%arg0: i32) -> (i32, i32, i32) {
    %c0_i32 = arith.constant 0 : i32
    %c0_i32_0 = arith.constant 0 : i32
    %c0_i32_1 = arith.constant 0 : i32
    %c0_i32_2 = arith.constant 0 : i32
    return %c0_i32, %c0_i32_0, %c0_i32_1 : i32, i32, i32
  }
  func.func @transform_2(%arg0: i32) -> (i32, i32) {
    %c0_i32 = arith.constant 0 : i32
    %c0_i32_0 = arith.constant 0 : i32
    %c0_i32_1 = arith.constant 0 : i32
    return %c0_i32, %c0_i32_0 : i32, i32
  }
  func.func @transform_3(%arg0: i32) -> (i32, i32) {
    %c0_i32 = arith.constant 0 : i32
    %c0_i32_0 = arith.constant 0 : i32
    %c0_i32_1 = arith.constant 0 : i32
    return %c0_i32, %c0_i32_0 : i32, i32
  }
  func.func @transform_4(%arg0: i32) -> (i32, i32) {
    %c0_i32 = arith.constant 0 : i32
    %c0_i32_0 = arith.constant 0 : i32
    %c0_i32_1 = arith.constant 0 : i32
    return %c0_i32, %c0_i32_0 : i32, i32
  }
  func.func @transform_5(%arg0: i32) -> (i32, i32) {
    %c0_i32 = arith.constant 0 : i32
    %c0_i32_0 = arith.constant 0 : i32
    %c0_i32_1 = arith.constant 0 : i32
    return %c0_i32, %c0_i32_0 : i32, i32
  }
  func.func @transform_6(%arg0: i32) -> (i32, i32, i32) {
    %c0_i32 = arith.constant 0 : i32
    %c0_i32_0 = arith.constant 0 : i32
    %c0_i32_1 = arith.constant 0 : i32
    return %arg0, %c0_i32, %c0_i32_0 : i32, i32, i32
  }
  func.func @transform_7(%arg0: i32) -> (i32, i32, i32, i32) {
    %c0_i32 = arith.constant 0 : i32
    %c0_i32_0 = arith.constant 0 : i32
    %c0_i32_1 = arith.constant 0 : i32
    %c0_i32_2 = arith.constant 0 : i32
    return %arg0, %c0_i32, %c0_i32_0, %c0_i32_1 : i32, i32, i32, i32
  }
}

</mosaic_0001>

<bundles_post_ra>
// kernel: tpu_custom_call.1
= control target key start
LH: loop header
LB: loop body
LE: loop exit
PB: predicated region body
PF: predicated region fallthrough
CT: control target
= control target key end

     0   :  { %s1924_s0 = inlined_call_operand.hbm [shape: f32[2,8,16], index: 0, kind: input, shape index: {}]   ;;  %s1925_s1 = inlined_call_operand.hbm [shape: s8[2,8,8], index: 1, kind: input, shape index: {}]   ;;  %s1926_s2 = inlined_call_operand.vmem [shape: f32[1,16], index: 2, kind: input, shape index: {}]   ;;  %s1927_s3 = inlined_call_operand.vmem [shape: f32[4,16], index: 3, kind: input, shape index: {}]   ;;  %s1928_s4 = inlined_call_operand.hbm [shape: f32[16,16], index: 4, kind: input, shape index: {}]   ;;  %s1929_s5 = inlined_call_operand.vmem [shape: f32[1,16], index: 5, kind: input, shape index: {}]   ;;  %s1930_s6 = inlined_call_operand.hbm [shape: f32[2,8,16], index: 6, kind: output, shape index: {0}]   ;;  %s1931_s7 = inlined_call_operand.hbm [shape: f32[2,4,8,8], index: 7, kind: output, shape index: {1}]  }
   0x1   :  { %1935 = sst [smem:[#allocation15_spill]] %s1924_s0 }
   0x2   :  { %13 = vsyncpa [#allocation3], 0 }
   0x3   :  { %15 = vsyncpa [#allocation3 + $0x1], 0 }
   0x4   :  { %16 = vsyncpa [#allocation6], 0 }
   0x5   :  { %17 = vsyncpa [#allocation4], 0 }
   0x6   :  { %19 = vsyncpa [#allocation4 + $0x1], 0 }
   0x7   :  { %20 = vsyncpa [#allocation10], 0 }
   0x8   :  { %22 = vsyncpa [#allocation10 + $0x1], 0  ;;  %s1574_s24 = smov 0   ;;  %s1576_s25 = smov 0  }
   0x9   :  { %s1578_s26 = smov 0   ;;  %s1580_s27 = smov 0  }
   0xa LB: > { %s1595_s28 = sadd.s32 4294967295, %s1512_s27   ;;  %s1131_s29 = sadd.s32 4294967294, %s1512_s27   ;;  %s1512_s27 = sphi %s1580_s27, %s1955_s27   ;;  %s1508_s26 = sphi %s1578_s26, %s1954_s26   ;;  %s1504_s25 = sphi %s1576_s25, %s1953_s25   ;;  %s1500_s24 = sphi %s1574_s24, %s1952_s24  }
   0xb   : > { %p48_p0 = scmp.ne.s32.totalorder %s1504_s25, %s1500_s24  ;;  %p1932_p1 = scmp.eq.s32.totalorder %s1595_s28, 0 }
   0xc   : > { %p183_p3 = scmp.eq.s32.totalorder %s1131_s29, 1  ;;  %p1132_p5 = scmp.ge.s32.totalorder %s1512_s27, 1 }
   0xd   : > { %p1604_p4 = por %p1932_p1, %p48_p0  ;;  %p216_p7 = scmp.lt.s32.totalorder %s1512_s27, 3 }
   0xe   : > { %p1609_p6 = por %p183_p3, %p48_p0  ;;  %s1514_s10 = smov [#allocation5]  }
   0xf   : > { %s1936_s30 = scalar_select %p1604_p4, 1, 0 }
  0x10   : > { %s1937_s8 = scalar_select %p1609_p6, 1, 0 }
  0x11   : > { %p1614_p8 = pnand %p1132_p5, %p216_p7  ;;  %s228_s11 = sshll.u32 %s1514_s10, 4  ;;  %s1618_s11 = int_to_ptr.vmem [resolvable:$true] %s228_s11 }
  0x12   : > { %s1515_s13 = smov [#allocation7]   ;;  %s1324_s17 = scalar_lea.hbm %s1925_s1, 64 }
  0x13   : > { %p1235_p9 = pneg %p1614_p8  ;;  %s247_s14 = sshll.u32 %s1515_s13, 4  ;;  %s1629_s14 = int_to_ptr.vmem [resolvable:$true] %s247_s14 }
  0x14   : > { %p1325_p12 = scmp.ne.s32.totalorder %s1925_s1, %s1324_s17  ;;  %p1331_p5 = scmp.lt.u32.totalorder %s1324_s17, %s1925_s1 }
  0x15   : > { %p1625_p11 = pnand %p1235_p9, %p1932_p1 }
  0x17   : > { %p1326_p13 = pneg %p1625_p11 }
  0x19   : > { %p1327_p0 = pnand %p1326_p13, %p1325_p12 }
  0x1b   : > { %p1328_p3 = pneg %p1327_p0 }
  0x1d   : > { %p1333_p7 = pnand %p1331_p5, %p1328_p3 }
  0x1f   : > { %1336 = shalt.err (!%p1333_p7)
}
  0x20   : > { %s1337_s22 = scalar_lea.vmem %s1618_s11, 64  ;;  %p1345_p2 = scmp.lt.s32.totalorder %s1618_s11, %s1618_s11 }
  0x21   : > { %p1338_p9 = scmp.ne.s32.totalorder %s1618_s11, %s1337_s22  ;;  %p1346_p12 = scmp.lt.s32.totalorder %s1337_s22, %s1337_s22 }
  0x23   : > { %p1340_p10 = pnand %p1338_p9, %p1326_p13  ;;  %p1347_p0 = por %p1346_p12, %p1345_p2 }
  0x25   : > { %p1341_p1 = pneg %p1340_p10 }
  0x27   : > { %p1348_p6 = pnand %p1347_p0, %p1341_p1 }
  0x29   : > { %1351 = shalt.err (!%p1348_p6)
}
  0x2a   : > { %s1516_s23 = smov 32   ;;  %s1517_s29 = smov 2  }
  0x2b   : > { %1238 = dma.hbm_to_vmem [thread:$0]  (!%p1625_p11), %s1925_s1, 64, %s1618_s11, [#allocation6], %s1516_s23, %s1516_s23, %s1517_s29  }
  0x2c   : > { %s1352_s17 = scalar_lea.hbm %s1928_s4, 256 }
  0x2d   : > { %p1353_p2 = scmp.ne.s32.totalorder %s1928_s4, %s1352_s17  ;;  %p1359_p10 = scmp.lt.u32.totalorder %s1352_s17, %s1928_s4 }
  0x2f   : > { %p1355_p1 = pnand %p1353_p2, %p1326_p13 }
  0x31   : > { %p1356_p6 = pneg %p1355_p1 }
  0x33   : > { %p1361_p3 = pnand %p1359_p10, %p1356_p6 }
  0x35   : > { %1364 = shalt.err (!%p1361_p3)
}
  0x36   : > { %s1365_s11 = scalar_lea.vmem %s1629_s14, 256  ;;  %p1373_p12 = scmp.lt.s32.totalorder %s1629_s14, %s1629_s14 }
  0x37   : > { %p1366_p5 = scmp.ne.s32.totalorder %s1629_s14, %s1365_s11  ;;  %p1374_p0 = scmp.lt.s32.totalorder %s1365_s11, %s1365_s11 }
  0x39   : > { %p1368_p7 = pnand %p1366_p5, %p1326_p13  ;;  %p1375_p2 = por %p1374_p0, %p1373_p12 }
  0x3b   : > { %p1369_p9 = pneg %p1368_p7 }
  0x3d   : > { %p1376_p1 = pnand %p1375_p2, %p1369_p9 }
  0x3f   : > { %1379 = shalt.err (!%p1376_p1)
}
  0x40   : > { %s1518_s22 = smov 128   ;;  %s1519_s23 = smov 8  }
  0x41   : > { %1241 = dma.hbm_to_vmem [thread:$0]  (!%p1625_p11), %s1928_s4, 256, %s1629_s14, [#allocation6], %s1518_s22, %s1518_s22, %s1519_s23  }
  0x42   : > { %s1684_s13 = sadd.s32 1, %s1512_s27   ;;  %s35_s16 = sadd.s32 1, %s1508_s26 }
  0x43   : > { %s32_s15 = ssub.s32 %s1512_s27, %s1684_s13  ;;  %p42_p6 = scmp.ne.s32.totalorder %s1508_s26, %s1504_s25 }
  0x44   : > { %p33_p13 = scmp.eq.s32.totalorder %s32_s15, 0  ;;  %p43_p10 = scmp.eq.s32.totalorder %s1512_s27, 0 }
  0x45   : > { %p1940_p5 = scmp.eq.s32.totalorder %s1595_s28, 1  ;;  %p1255_p9 = scmp.lt.s32.totalorder %s1512_s27, 2 }
  0x46   : > { %s1693_s17 = scalar_select %p33_p13, %s1508_s26, %s35_s16  }
  0x47   : > { %p44_p3 = por %p43_p10, %p42_p6  ;;  %p1697_p7 = por %p1940_p5, %p42_p6 }
  0x48   : > { %s264_s12 = sand.u32 1, %s1508_s26   ;;  %s1137_s14 = sshll.u32 %s1512_s27, 7 }
  0x49   : > { %s1941_s18 = scalar_select %p1697_p7, 1, 0 }
  0x4a   : > { %s1136_s19 = sshll.u32 %s264_s12, 3  ;;  %s1942_s0 = sld [smem:[#allocation15_spill]] }
  0x4b   : > { %s268_s22 = scalar_lea.vmem [#allocation2], %s1136_s19  ;;  %p1711_p11 = pnand %p1255_p9, %p44_p3 }
  0x4c   : > { %s275_s23 = sshll.u32 %s268_s22, 4  ;;  %s265_s10 = scalar_lea.sflag [#allocation3], %s264_s12  ;;  %s1709_s23 = int_to_ptr.vmem [resolvable:$true] %s275_s23 }
  0x4d   : > { %p1382_p0 = pneg %p1711_p11 }
  0x50   : > { %s1707_s11 = scalar_lea.hbm %s1942_s0, %s1137_s14  ;;  %s1385_s14 = scalar_lea.hbm %s1942_s0, 256 }
  0x51   : > { %s1380_s15 = scalar_lea.hbm %s1707_s11, 128  ;;  %p1386_p13 = scmp.lt.u32.totalorder %s1707_s11, %s1942_s0 }
  0x52   : > { %p1381_p12 = scmp.ne.s32.totalorder %s1707_s11, %s1380_s15  ;;  %p1387_p6 = scmp.lt.u32.totalorder %s1385_s14, %s1380_s15 }
  0x53   : > { %p1389_p3 = scmp.lt.u32.totalorder %s1380_s15, %s1707_s11 }
  0x54   : > { %p1383_p2 = pnand %p1382_p0, %p1381_p12  ;;  %p1388_p10 = por %p1387_p6, %p1386_p13 }
  0x56   : > { %p1384_p1 = pneg %p1383_p2  ;;  %p1390_p5 = por %p1389_p3, %p1388_p10 }
  0x58   : > { %p1391_p9 = pnand %p1390_p5, %p1384_p1 }
  0x5a   : > { %1394 = shalt.err (!%p1391_p9)
}
  0x5b   : > { %s1395_s12 = scalar_lea.vmem %s1709_s23, 128  ;;  %s1520_s22 = smov [#allocation2]  }
  0x5c   : > { %p1396_p12 = scmp.ne.s32.totalorder %s1709_s23, %s1395_s12  ;;  %s1400_s16 = sshll.u32 %s1520_s22, 4  ;;  %s1401_s16 = int_to_ptr.vmem [resolvable:$false] %s1400_s16 }
  0x5d   : > { %s1402_s19 = scalar_lea.vmem %s1401_s16, 256  ;;  %p1403_p4 = scmp.lt.s32.totalorder %s1709_s23, %s1401_s16 }
  0x5e   : > { %p1398_p2 = pnand %p1396_p12, %p1382_p0  ;;  %p1404_p13 = scmp.lt.s32.totalorder %s1402_s19, %s1395_s12 }
  0x60   : > { %p1399_p7 = pneg %p1398_p2  ;;  %p1405_p6 = por %p1404_p13, %p1403_p4 }
  0x62   : > { %p1406_p10 = pnand %p1405_p6, %p1399_p7 }
  0x64   : > { %1409 = shalt.err (!%p1406_p10)
}
  0x65   : > { %1245 = dma.hbm_to_vmem [thread:$0]  (!%p1711_p11), %s1707_s11, 128, %s1709_s23, %s265_s10  }
  0x66   : > { %284 = sbr.rel (%p1614_p8) target bundleno = 1308 (0x51c), region = 44  ;;  %s1743_s15 = sand.u32 (!%p1614_p8), 1, %s1504_s25  }
  0x67   : > { %s1139_s14 = sshll.u32 (!%p1614_p8), %s1743_s15, 3  ;;  %s287_s20 = scalar_lea.sflag (!%p1614_p8), [#allocation3], %s1743_s15 }
  0x68   : > { %s290_s21 = scalar_lea.vmem (!%p1614_p8), [#allocation2], %s1139_s14  ;;  %p1944_p4 = scmp.ne.s32.totalorder (!%p1614_p8), %s1936_s30, 0 }
  0x6d   : > { %1483 = dma.done.wait (%p1944_p4), %s287_s20, 128  }
  0x6e   : > { %1485 = vsyncadd (%p1944_p4), %s287_s20, 4294967168  ;;  %p1945_p7 = scmp.eq.s32.totalorder %s1595_s28, 0 }
  0x70   : > { %1487 = dma.done.wait (%p1945_p7), [#allocation6], 320   ;;  %p1946_p8 = pmov %p1945_p7 }
  0x71   : > { %v1521_v0 = vmov 0.0   ;;  %vm1522_vm0 = vmmov 0   ;;  %vm338_vm1 = vcmask 130048   ;;  %v1763_v1 = vld [vmem:[%s290_s21] sm:$0xff]  ;;  %s1523_s29 = smov 116   ;;  %s1524_s10 = smov 124   ;;  %v444_v12 = vlaneseq }
  0x72   : > { %1489 = vsyncadd (%p1946_p8), [#allocation6], 4294966976  ;;  %1186 = vmatprep.subr.mxu0 %v1521_v0  ;;  %1188 = vmatprep.mubr.msk.f32.mxu0 %vm1522_vm0, %v1521_v0  ;;  %v1146_v2 = vld [vmem:[%s1926_s2] ss:$0 sm:$0xff]  ;;  %s1525_s12 = smov 120   ;;  %vm440_vm2 = vcmask 31744  }
  0x73   : > { %1191 = vmatprep.subr.mxu1 %v1521_v0  ;;  %1193 = vmatprep.mubr.msk.f32.mxu1 %vm1522_vm0, %v1521_v0  ;;  %v422_v3 = vmul.f32 %v1146_v2, %v1763_v1  ;;  %v337_v4 = vld [vmem:[%s1927_s3] sm:$0xf]  ;;  %s1147_s22 = sshll.u32 %s1595_s28, 2  ;;  %v445_v13 = vshrl.u32 %v444_v12, 7  ;;  %v1526_v16 = vmov 0   ;;  %vm455_vm5 = vcmask 64512  }
  0x74   : > { %1187 = vmatpush3.xpose.msk.msra.mxu0 %vm338_vm1, %v1763_v1  ;;  %1192 = vmatpush3.msra.mxu1 %v1763_v1  ;;  %s425_s16 = ssub.s32 0, %s1147_s22  ;;  %p424_p11 = scmp.lt.s32.totalorder %s1147_s22, 0  ;;  %vm885_vm8 = vcmask 97280  }
  0x75   : > { %1201 = vmatprep.subr.mxu0 %v1521_v0  ;;  %1196 = vmatprep.subr.mxu1 %v1521_v0  ;;  %v441_v5 = vsel %vm440_vm2, %v422_v3, 0.0  ;;  %s1148_s19 = smin.u32 %s1147_s22, %s425_s16  ;;  %v446_v15 = vsub.s32 0, %v445_v13  ;;  %s541_s23 = sadd.s32 1, %s1147_s22  ;;  %v567_v30 = vsub.s32 1, %v445_v13  ;;  %v776_v31 = vsub.s32 3, %v445_v13 }
  0x76   : > { %768 = vrot.lane.b32.xlu1 %v422_v3, %s1523_s29  ;;  %559 = vrot.lane.b32.xlu0 %v422_v3, %s1524_s10  ;;  %s427_s20 = sand.u32 1, %s1148_s19   ;;  %s543_s16 = ssub.s32 0, %s541_s23  ;;  %v673_v35 = vsub.s32 2, %v445_v13 }
  0x77   : > { %1189 = vmatmul.mubr.msk.f32.vlgmr.msra.gmra.mrb[0].mxu0 %vm338_vm1, %v337_v4  ;;  %s428_s21 = ssub.s32 0, %s427_s20  ;;  %s1153_s19 = smin.u32 %s543_s16, %s541_s23 }
  0x78   : > { %1203 = vmatprep.mubr.msk.f32.mxu0 %vm1522_vm0, %v1521_v0  ;;  %s1957_s21 = smov (!%p424_p11, %s428_s21), %s427_s20  ;;  %s545_s20 = sand.u32 1, %s1153_s19  }
  0x79   : > { %p1150_p0 = scmp.lt.s32.totalorder %s1957_s21, 0  ;;  %s434_s30 = sadd.s32 2, %s1957_s21 }
  0x7a   : > { %665 = vrot.lane.b32.xlu0 %v422_v3, %s1525_s12  ;;  %p542_p1 = scmp.lt.s32.totalorder %s541_s23, 0  ;;  %s1530_s23 = smov 12  }
  0x7b   : > { %s1959_s30 = smov (!%p1150_p0, %s434_s30), %s1957_s21  ;;  %s546_s21 = ssub.s32 0, %s545_s20 }
  0x7c   : > { %s1151_s9 = sshll.u32 %s1959_s30, 1  ;;  %s1961_s21 = smov (!%p542_p1, %s546_s21), %s545_s20 }
  0x7d   : > { %s437_s11 = scalar_lea.vmem [#allocation5], %s1151_s9  ;;  %p1155_p3 = scmp.lt.s32.totalorder %s1961_s21, 0 }
  0x7e   : > { %v438_v14 = vld [vmem:[%s437_s11] sm:$0x3]  ;;  %s552_s22 = sadd.s32 2, %s1961_s21  ;;  %s1143_s11 = sshll.u32 %s1743_s15, 5 }
  0x7f   : > { %vm439_vm3 = vnez %v438_v14  ;;  %s1963_s22 = smov (!%p1155_p3, %s552_s22), %s1961_s21  ;;  %s1172_s16 = sshll.u32 %s1595_s28, 9 }
  0x80   : > { %v451_v17 = vsel %vm439_vm3, 16843009, %v1526_v16  ;;  %s1156_s30 = sshll.u32 %s1963_s22, 1  ;;  %s1841_s22 = scalar_lea.hbm %s1931_s7, %s1172_s16 }
  0x81   : > { %v452_v22 = vunpack.c.0.s8 %v451_v17  ;;  %s555_s9 = scalar_lea.vmem [#allocation5], %s1156_s30  ;;  %s977_s30 = scalar_lea.sflag [#allocation10], %s1743_s15 }
  0x82   : > { %v556_v29 = vld [vmem:[%s555_s9] sm:$0x3]  ;;  %p1949_p9 = scmp.ne.s32.totalorder %s1941_s18, 0 }
  0x83   : > { %vm1788_vm4 = vcmp.ne.s32.totalorder %v452_v22, 0  ;;  %vm557_vm6 = vnez %v556_v29 }
  0x84   : > { %v572_v34 = vsel %vm557_vm6, 16843009, %v1526_v16 }
  0x85   : > { %v573_v38 = vunpack.c.0.s8 %v572_v34 }
  0x87   : > { %vm574_vm7 = vcmp.ne.s32.totalorder %v573_v38, 0 }
  0x9a   : > { %442 = vadd.xlane.f32.xlu1 %v441_v5 }
  0xe8   : > { %v769_v6 = vpop.permute.xlu1 %768  ;;  %v560_v7 = vpop.permute.xlu0 %559 }
  0xe9   : > { %v562_v8 = vsel %vm440_vm2, %v560_v7, 0.0  ;;  %v771_v9 = vsel %vm440_vm2, %v769_v6, 0.0 }
  0xea   : > { %563 = vadd.xlane.f32.xlu0 %v562_v8  ;;  %772 = vadd.xlane.f32.xlu1 %v771_v9 }
  0xec   : > { %v666_v10 = vpop.permute.xlu0 %665 }
  0xed   : > { %v668_v11 = vsel %vm440_vm2, %v666_v10, 0.0 }
  0xee   : > { %669 = vadd.xlane.f32.xlu0 %v668_v11 }
 0x127   : > { %v443_v19 = vpop.xlane.xlu1 %442 }
 0x14a   : > { %v411_v18 = vpop.f32.mrb[0].mxu0 }
 0x14b   : > { %v447_v20 = vrot.slane %v411_v18, %v446_v15  ;;  %v1190_v21 = vpop.f32.mrb[1].mxu0  ;;  %v568_v32 = vrot.slane %v411_v18, %v567_v30  ;;  %v777_v33 = vrot.slane %v411_v18, %v776_v31  ;;  %v674_v43 = vrot.slane %v411_v18, %v673_v35  ;;  %v888_v30 = vld [vmem:[#allocation7] sm:$0xff]  ;;  %v889_v31 = vld [vmem:[#allocation7 + $0x8] sm:$0xff] }
 0x14d   : > { %v448_v23 = vadd.f32 %v447_v20, %v443_v19 }
 0x14f   : > { %v449_v24 = vmul.f32 0.01, %v448_v23 }
 0x151   : > { %v450_v26 = vmax.f32 %v448_v23, %v449_v24 }
 0x153   : > { %v454_v27 = vsel %vm1788_vm4, %v450_v26, -1e+09 }
 0x154   : > { %v456_v28 = vsel %vm455_vm5, %v454_v27, -inf }
 0x155   : > { %457 = vmax.xlane.f32.xlu0 %v456_v28 }
 0x177   : > { %v564_v36 = vpop.xlane.xlu0 %563  ;;  %v773_v37 = vpop.xlane.xlu1 %772 }
 0x178   : > { %v569_v39 = vadd.f32 %v568_v32, %v564_v36  ;;  %v778_v40 = vadd.f32 %v777_v33, %v773_v37  ;;  %v1527_v32 = vmov 0.0|0.0   ;;  %v1219_v33 = vpack.c.bf16 %v889_v31, %v888_v30 }
 0x17a   : > { %v570_v41 = vmul.f32 0.01, %v569_v39  ;;  %v779_v42 = vmul.f32 0.01, %v778_v40 }
 0x17b   : > { %v670_v44 = vpop.xlane.xlu0 %669 }
 0x17c   : > { %v571_v45 = vmax.f32 %v569_v39, %v570_v41  ;;  %v780_v46 = vmax.f32 %v778_v40, %v779_v42  ;;  %v675_v47 = vadd.f32 %v674_v43, %v670_v44 }
 0x17e   : > { %v676_v48 = vmul.f32 0.01, %v675_v47  ;;  %v575_v49 = vsel %vm574_vm7, %v571_v45, -1e+09  ;;  %v781_v52 = vsel %vm574_vm7, %v780_v46, -1e+09 }
 0x17f   : > { %v576_v50 = vsel %vm455_vm5, %v575_v49, -inf  ;;  %v782_v54 = vsel %vm455_vm5, %v781_v52, -inf }
 0x180   : > { %v677_v51 = vmax.f32 %v675_v47, %v676_v48  ;;  %577 = vmax.xlane.f32.xlu1 %v576_v50 }
 0x182   : > { %v678_v53 = vsel %vm1788_vm4, %v677_v51, -1e+09 }
 0x183   : > { %v679_v55 = vsel %vm455_vm5, %v678_v53, -inf }
 0x184   : > { %783 = vmax.xlane.f32.xlu1 %v782_v54  ;;  %680 = vmax.xlane.f32.xlu0 %v679_v55 }
 0x1e2   : > { %v458_v56 = vpop.xlane.xlu0 %457 }
 0x1e3   : > { %v459_v57 = vsub.f32 %v454_v27, %v458_v56 }
 0x1e5   : > { %v460_v58 = vmul.f32 1.442695, %v459_v57 }
 0x1e7   : > { %1308 = vpow2.f32 %v460_v58 }
 0x1f1   : > { %v1309_v59 = vpop.eup %1308 }
 0x1f2   : > { %v462_v60 = vsel %vm455_vm5, %v1309_v59, 0.0 }
 0x1f3   : > { %463 = vadd.xlane.f32.xlu0 %v462_v60 }
 0x20d   : > { %v578_v61 = vpop.xlane.xlu1 %577 }
 0x20e   : > { %v579_v62 = vsub.f32 %v575_v49, %v578_v61 }
 0x210   : > { %v580_v63 = vmul.f32 1.442695, %v579_v62 }
 0x211   : > { %v681_v2 = vpop.xlane.xlu0 %680  ;;  %v784_v9 = vpop.xlane.xlu1 %783 }
 0x212   : > { %1310 = vpow2.f32 %v580_v63  ;;  %v682_v3 = vsub.f32 %v678_v53, %v681_v2  ;;  %v785_v10 = vsub.f32 %v781_v52, %v784_v9 }
 0x214   : > { %v683_v4 = vmul.f32 1.442695, %v682_v3  ;;  %v786_v11 = vmul.f32 1.442695, %v785_v10 }
 0x216   : > { %1312 = vpow2.f32 %v683_v4 }
 0x217   : > { %1314 = vpow2.f32 %v786_v11 }
 0x21c   : > { %v1311_v5 = vpop.eup %1310 }
 0x21d   : > { %v582_v6 = vsel %vm455_vm5, %v1311_v5, 0.0 }
 0x21e   : > { %583 = vadd.xlane.f32.xlu1 %v582_v6 }
 0x220   : > { %v1313_v7 = vpop.eup %1312 }
 0x221   : > { %v685_v8 = vsel %vm455_vm5, %v1313_v7, 0.0  ;;  %v1315_v12 = vpop.eup %1314 }
 0x222   : > { %686 = vadd.xlane.f32.xlu0 %v685_v8  ;;  %v788_v13 = vsel %vm455_vm5, %v1315_v12, 0.0 }
 0x22f   : > { %692 = vrot.lane.b32.xlu1 %v1763_v1, %s1525_s12  ;;  %s1811_s12 = scalar_lea.vmem [#allocation9], %s1143_s11  ;;  %s1531_s11 = smov [#allocation9]  }
 0x230   : > { %s1003_s19 = sshll.u32 %s1811_s12, 4  ;;  %s1843_s19 = int_to_ptr.vmem [resolvable:$true] %s1003_s19 }
 0x231   : > { %s1410_s9 = scalar_lea.vmem %s1843_s19, 512 }
 0x232   : > { %p1411_p5 = scmp.ne.s32.totalorder %s1843_s19, %s1410_s9 }
 0x234   : > { %p1412_p12 = pnand %p1411_p5, %p1949_p9 }
 0x236   : > { %p1413_p2 = pneg %p1412_p12 }
 0x238   : > { %589 = vrot.lane.b32.xlu0 %v1763_v1, %s1524_s10  ;;  %s1529_s10 = smov 8  }
 0x253   : > { %789 = vadd.xlane.f32.xlu1 %v788_v13 }
 0x264   : > { %795 = vrot.lane.b32.xlu1 %v1763_v1, %s1523_s29  ;;  %s1528_s29 = smov 4  }
 0x280   : > { %v464_v14 = vpop.xlane.xlu0 %463 }
 0x281   : > { %1316 = vrcp.f32 %v464_v14 }
 0x28b   : > { %v1317_v15 = vpop.eup %1316 }
 0x28c   : > { %v466_v16 = vmul.f32 %v1317_v15, %v1309_v59 }
 0x28e   : > { %467 = vst.msk [vmem:[%s1811_s12] sm:$0xff] %vm455_vm5, %v466_v16  ;;  %1194 = vmatmul.mubr.msk.f32.vlgmr.msra.gmra.mrb[0].mxu1 %vm455_vm5, %v466_v16 }
 0x28f   : > { %1198 = vmatprep.mubr.msk.f32.mxu1 %vm1522_vm0, %v1521_v0 }
 0x2ab   : > { %v584_v17 = vpop.xlane.xlu1 %583 }
 0x2ac   : > { %1318 = vrcp.f32 %v584_v17 }
 0x2af   : > { %v693_v1 = vpop.permute.xlu1 %692  ;;  %v687_v18 = vpop.xlane.xlu0 %686 }
 0x2b0   : > { %1202 = vmatpush3.msra.mxu0 %v693_v1  ;;  %1320 = vrcp.f32 %v687_v18 }
 0x2b1   : > { %1218 = vmatprep.subr.bf16.mxu0 %v1527_v32 }
 0x2b3   : > { %v590_v19 = vpop.permute.xlu0 %589 }
 0x2b4   : > { %1197 = vmatpush3.msra.mxu1 %v590_v19 }
 0x2b5   : > { %1206 = vmatprep.subr.mxu1 %v1521_v0 }
 0x2b6   : > { %v1319_v20 = vpop.eup %1318 }
 0x2b7   : > { %v586_v21 = vmul.f32 %v1319_v20, %v1311_v5 }
 0x2b9   : > { %1157 = vst.msk [vmem:[%s1811_s12 + $0x8] sm:$0xff] %vm455_vm5, %v586_v21  ;;  %1199 = vmatmul.mubr.msk.f32.vlgmr.msra.gmra.mrb[2].mxu1 %vm455_vm5, %v586_v21 }
 0x2ba   : > { %1208 = vmatprep.mubr.msk.f32.mxu1 %vm1522_vm0, %v1521_v0  ;;  %v1321_v22 = vpop.eup %1320 }
 0x2bb   : > { %v689_v23 = vmul.f32 %v1321_v22, %v1313_v7 }
 0x2bd   : > { %1159 = vst.msk [vmem:[%s1811_s12 + $0x10] sm:$0xff] %vm455_vm5, %v689_v23  ;;  %1204 = vmatmul.mubr.msk.f32.vlgmr.msra.gmra.mrb[2].mxu0 %vm455_vm5, %v689_v23 }
 0x2be   : > { %1215 = vmatprep.mubr.msk.f32.mxu0 %vm1522_vm0, %v1521_v0  ;;  %1220 = vmatpush3.bf16.msra.mxu0 %v1219_v33 }
 0x2e0   : > { %v790_v24 = vpop.xlane.xlu1 %789 }
 0x2e1   : > { %1322 = vrcp.f32 %v790_v24 }
 0x2e4   : > { %v796_v25 = vpop.permute.xlu1 %795 }
 0x2e5   : > { %1207 = vmatpush3.msra.mxu1 %v796_v25 }
 0x2eb   : > { %v1323_v26 = vpop.eup %1322 }
 0x2ec   : > { %v792_v27 = vmul.f32 %v1323_v26, %v1315_v12 }
 0x2ee   : > { %1161 = vst.msk [vmem:[%s1811_s12 + $0x18] sm:$0xff] %vm455_vm5, %v792_v27  ;;  %1209 = vmatmul.mubr.msk.f32.vlgmr.msra.gmra.mrb[4].mxu1 %vm455_vm5, %v792_v27 }
 0x361   : > { %v537_v28 = vpop.f32.mrb[0].mxu1 }
 0x362   : > { %v1195_v29 = vpop.f32.mrb[1].mxu1 }
 0x38c   : > { %v661_v34 = vpop.f32.mrb[2].mxu1 }
 0x38d   : > { %872 = vrot.lane.b32.xlu0 %v661_v34, %s1528_s29  ;;  %v1200_v0 = vpop.f32.mrb[3].mxu1  ;;  %s1414_s29 = sshll.u32 %s1531_s11, 4  ;;  %s1415_s29 = int_to_ptr.vmem [resolvable:$false] %s1414_s29 }
 0x38e   : > { %s1416_s12 = scalar_lea.vmem %s1415_s29, 1024  ;;  %p1417_p13 = scmp.lt.s32.totalorder %s1843_s19, %s1415_s29 }
 0x38f   : > { %p1418_p6 = scmp.lt.s32.totalorder %s1416_s12, %s1410_s9 }
 0x390   : > { %v764_v35 = vpop.f32.mrb[2].mxu0 }
 0x391   : > { %876 = vrot.lane.b32.xlu1 %v764_v35, %s1529_s10  ;;  %v1205_v36 = vpop.f32.mrb[3].mxu0  ;;  %p1419_p10 = por %p1418_p6, %p1417_p13 }
 0x393   : > { %p1420_p4 = pnand %p1419_p10, %p1413_p2 }
 0x3c1   : > { %v867_v37 = vpop.f32.mrb[4].mxu1 }
 0x3c2   : > { %880 = vrot.lane.b32.xlu0 %v867_v37, %s1530_s23  ;;  %v1210_v38 = vpop.f32.mrb[5].mxu1 }
 0x3ff   : > { %v873_v39 = vpop.permute.xlu0 %872 }
 0x400   : > { %v883_v41 = vsel %vm440_vm2, %v537_v28, %v873_v39 }
 0x403   : > { %v877_v40 = vpop.permute.xlu1 %876 }
 0x404   : > { %v884_v42 = vsel %vm455_vm5, %v883_v41, %v877_v40 }
 0x434   : > { %v881_v43 = vpop.permute.xlu0 %880 }
 0x435   : > { %v886_v44 = vsel %vm885_vm8, %v884_v42, %v881_v43 }
 0x436   : > { %v887_v45 = vmax.f32 %v886_v44, 0.0 }
 0x438   : > { %1216 = vmatmul.mubr.msk.f32.vlgmr.msra.gmra.mrb[4].mxu0 %vm338_vm1, %v887_v45 }
 0x439   : > { %1423 = shalt.err (!%p1420_p4)
}
 0x43a   : > { %s1424_s23 = scalar_lea.hbm %s1841_s22, 512  ;;  %s1428_s21 = scalar_lea.hbm %s1931_s7, 1024 }
 0x43b   : > { %p1425_p7 = scmp.ne.s32.totalorder %s1841_s22, %s1424_s23  ;;  %p1429_p0 = scmp.lt.u32.totalorder %s1841_s22, %s1931_s7 }
 0x43c   : > { %p1430_p1 = scmp.lt.u32.totalorder %s1428_s21, %s1424_s23  ;;  %p1432_p5 = scmp.lt.u32.totalorder %s1424_s23, %s1841_s22 }
 0x43d   : > { %p1426_p8 = pnand %p1425_p7, %p1949_p9 }
 0x43e   : > { %p1431_p3 = por %p1430_p1, %p1429_p0 }
 0x43f   : > { %p1427_p11 = pneg %p1426_p8 }
 0x440   : > { %p1433_p12 = por %p1432_p5, %p1431_p3 }
 0x442   : > { %p1434_p2 = pnand %p1433_p12, %p1427_p11 }
 0x444   : > { %1437 = shalt.err (!%p1434_p2)
}
 0x445   : > { %s1532_s9 = smov 128   ;;  %v1163_v46 = vld [vmem:[%s1929_s5] ss:$0 sm:$0xff]  ;;  %s1167_s23 = sshll.u32 %s1595_s28, 7 }
 0x446   : > { %1232 = dma.vmem_to_hbm [thread:$0]  (%p1949_p9), %s1843_s19, 512, %s1841_s22, %s977_s30, %s1532_s9, %s1532_s9, %s1529_s10  }
 0x447   : > { %s326_s20 = scalar_lea.vmem [#allocation8], %s1139_s14  ;;  %s1879_s0 = scalar_lea.hbm %s1930_s6, %s1167_s23 }
 0x448   : > { %s990_s21 = sshll.u32 %s326_s20, 4  ;;  %s972_s10 = scalar_lea.sflag [#allocation4], %s1743_s15  ;;  %s1881_s21 = int_to_ptr.vmem [resolvable:$true] %s990_s21 }
 0x449   : > { %s1438_s28 = scalar_lea.vmem %s1881_s21, 128  ;;  %s1533_s14 = smov [#allocation8]  }
 0x44a   : > { %p1439_p13 = scmp.ne.s32.totalorder %s1881_s21, %s1438_s28  ;;  %s1442_s19 = sshll.u32 %s1533_s14, 4  ;;  %s1443_s19 = int_to_ptr.vmem [resolvable:$false] %s1442_s19 }
 0x44b   : > { %s1444_s22 = scalar_lea.vmem %s1443_s19, 256  ;;  %p1445_p4 = scmp.lt.s32.totalorder %s1881_s21, %s1443_s19 }
 0x44c   : > { %p1440_p6 = pnand %p1439_p13, %p1949_p9  ;;  %p1446_p7 = scmp.lt.s32.totalorder %s1444_s22, %s1438_s28 }
 0x44e   : > { %p1441_p10 = pneg %p1440_p6  ;;  %p1447_p8 = por %p1446_p7, %p1445_p4 }
 0x450   : > { %p1448_p11 = pnand %p1447_p8, %p1441_p10 }
 0x50b   : > { %v966_v47 = vpop.f32.mrb[4].mxu0 }
 0x50c   : > { %v967_v48 = vadd.f32 %v1163_v46, %v966_v47  ;;  %v1217_v49 = vpop.f32.mrb[5].mxu0 }
 0x50e   : > { %970 = vst.msk [vmem:[%s326_s20] sm:$0xff] %vm338_vm1, %v967_v48 }
 0x50f   : > { %1451 = shalt.err (!%p1448_p11)
}
 0x510   : > { %s1452_s15 = scalar_lea.hbm %s1879_s0, 128  ;;  %s1456_s12 = scalar_lea.hbm %s1930_s6, 256 }
 0x511   : > { %p1453_p0 = scmp.ne.s32.totalorder %s1879_s0, %s1452_s15  ;;  %p1457_p5 = scmp.lt.u32.totalorder %s1879_s0, %s1930_s6 }
 0x512   : > { %p1458_p12 = scmp.lt.u32.totalorder %s1456_s12, %s1452_s15  ;;  %p1460_p13 = scmp.lt.u32.totalorder %s1452_s15, %s1879_s0 }
 0x513   : > { %p1454_p1 = pnand %p1453_p0, %p1949_p9 }
 0x514   : > { %p1459_p2 = por %p1458_p12, %p1457_p5 }
 0x515   : > { %p1455_p3 = pneg %p1454_p1 }
 0x516   : > { %p1461_p6 = por %p1460_p13, %p1459_p2 }
 0x518   : > { %p1462_p10 = pnand %p1461_p6, %p1455_p3 }
 0x51a   : > { %1465 = shalt.err (!%p1462_p10)
}
 0x51b   : > { %1231 = dma.vmem_to_hbm [thread:$0]  (%p1949_p9), %s1881_s21, 128, %s1879_s0, %s972_s10  }
 0x51c PF: > { %s1018_s20 = sand.u32 1, %s1500_s24   ;;  %p1950_p4 = scmp.ne.s32.totalorder %s1937_s8, 0 }
 0x51d   : > { %p1951_p7 = scmp.ge.s32.totalorder %s1512_s27, 2  ;;  %s1019_s11 = scalar_lea.sflag [#allocation4], %s1018_s20 }
 0x51f   : > { %p1247_p8 = pnand %p1951_p7, %p1950_p4 }
 0x521   : > { %1491 = dma.done.wait (!%p1247_p8), %s1019_s11, 128  }
 0x522   : > { %1493 = vsyncadd (!%p1247_p8), %s1019_s11, 4294967168  ;;  %s1028_s29 = scalar_lea.sflag [#allocation10], %s1018_s20 }
 0x523   : > { %1495 = dma.done.wait (!%p1247_p8), %s1028_s29, 512  }
 0x524   : > { %1497 = vsyncadd (!%p1247_p8), %s1028_s29, 4294966784  ;;  %p25_p9 = scmp.ge.s32.totalorder %s1684_s13, 4   ;;  %s1952_s24 = smov %s1504_s25 }
 0x525   : > { %s1953_s25 = smov %s1508_s26  ;;  %s1954_s26 = smov %s1693_s17 }
 0x526   : > { %s1955_s27 = smov %s1684_s13  ;;  %27 = sbr.rel (!%p25_p9) target bundleno = 10 (0xa), region = 119 }
 0x52d   :  { %1033 = vsyncpa [#allocation3], 1 }
 0x52e   :  { %1035 = vsyncpa [#allocation3 + $0x1], 1 }
 0x52f   :  { %1036 = vsyncpa [#allocation6], 1 }
 0x530   :  { %1037 = vsyncpa [#allocation4], 1 }
 0x531   :  { %1039 = vsyncpa [#allocation4 + $0x1], 1 }
 0x532   :  { %1040 = vsyncpa [#allocation10], 1 }
 0x533   :  { %1042 = vsyncpa [#allocation10 + $0x1], 1 }

</bundles_post_ra>
